<compile_context>
chip_gen: v7x
topology: tpu7x:2x2x1
jax: 0.10.0
libtpu: 0.0.40
codegen_flags: <defaults>
</compile_context>

<pallas_src>
import functools

import jax
import jax.numpy as jnp
from jax.experimental import pallas as pl
from jax.experimental.pallas import tpu as pltpu


LANE = 128          # TPU lane width: pad the task axis to a multiple of this
BATCH_TILE = 128    # batch rows per grid step (multiple of 8 sublanes)


def _round_up(n, m):
    return ((n + m - 1) // m) * m


def clbaseline_kernel(x_ref, w1_ref, b1_ref, omega_t_ref, out_ref):
    """Fused base-MLP + all-task heads + sigmoid (lane-dense output).

    x_ref:       [TB, D_in]   bf16 input tile (batch rows on sublanes)
    w1_ref:      [D_in, H]    bf16 base-model weight  (VMEM-resident across grid)
    b1_ref:      [1, H]       f32  base-model bias    (VMEM-resident)
    omega_t_ref: [H, T_pad]   bf16 stacked task omegas, zero-padded to 128 lanes
    out_ref:     [TB, T_pad]  f32  sigmoid probabilities for every task head
    """
    # base(x): Linear on the MXU (bf16 in, f32 accumulate), bias + ReLU in f32.
    h = jnp.dot(x_ref[...], w1_ref[...], preferred_element_type=jnp.float32)
    h = jnp.maximum(h + b1_ref[...], 0.0)
    # All task heads at once: [TB, H] @ [H, T_pad] -> lane-dense MXU matmul
    # (replaces the old K=32, N=1 rank-1 matmul).
    logits = jnp.dot(h.astype(omega_t_ref.dtype), omega_t_ref[...],
                     preferred_element_type=jnp.float32)
    # Sigmoid runs on the EUP; [TB, T_pad] output keeps stores unmasked.
    out_ref[...] = jax.nn.sigmoid(logits)


@functools.partial(jax.jit, static_argnames=("mxu_dtype",))
def clbaseline_predict_all_tasks(x, w1, b1, omegas, mxu_dtype=jnp.bfloat16):
    """probs[b, t] = sigmoid(base(x[b]) @ omegas[t].T) for every task head t.

    x:      [B, D_in] f32
    w1:     [D_in, H] f32 base-model weight
    b1:     [H]       f32 base-model bias
    omegas: [T, H]    f32 stack of the module's out_dim == 1 task omegas
    """
    B, d_in = x.shape
    H = w1.shape[1]
    T = omegas.shape[0]

    TB = min(BATCH_TILE, _round_up(B, 8))
    B_pad = _round_up(B, TB)
    T_pad = _round_up(T, LANE)

    # MXU operands in bf16 (native rate on v6e/v7x, halves HBM/VMEM traffic);
    # elementwise math stays f32 inside the kernel.
    x_p = jnp.zeros((B_pad, d_in), mxu_dtype).at[:B].set(x.astype(mxu_dtype))
    w1_c = w1.astype(mxu_dtype)
    b1_2d = b1.reshape(1, H).astype(jnp.float32)
    # Store omegas lane-major as [H, T_pad] (avoids the padded [H, 1] column
    # layout of the old per-task omega.T operand).
    omega_t = jnp.zeros((H, T_pad), mxu_dtype).at[:, :T].set(
        omegas.T.astype(mxu_dtype))

    grid = (B_pad // TB,)
    probs = pl.pallas_call(
        clbaseline_kernel,
        out_shape=jax.ShapeDtypeStruct((B_pad, T_pad), jnp.float32),
        grid_spec=pltpu.PrefetchScalarGridSpec(
            num_scalar_prefetch=0,
            grid=grid,
            in_specs=[
                pl.BlockSpec((TB, d_in), lambda i: (i, 0)),   # x: streamed tile
                pl.BlockSpec((d_in, H), lambda i: (0, 0)),    # w1: resident
                pl.BlockSpec((1, H), lambda i: (0, 0)),       # b1: resident
                pl.BlockSpec((H, T_pad), lambda i: (0, 0)),   # omegas: resident
            ],
            out_specs=pl.BlockSpec((TB, T_pad), lambda i: (i, 0)),
        ),
        compiler_params=pltpu.CompilerParams(
            # Batch axis is embarrassingly parallel -> v7x shards it over 2 TCs.
            dimension_semantics=("parallel",),
        ),
    )(x_p, w1_c, b1_2d, omega_t)
    return probs[:B, :T]


def clbaseline_predict(x, k, w1, b1, omegas, mxu_dtype=jnp.bfloat16):
    """Matches CLBaseline.predict(x, k) for out_dim == 1:
    stack([1 - sigmoid(l_k), sigmoid(l_k)], dim=-1)."""
    probs = clbaseline_predict_all_tasks(x, w1, b1, omegas, mxu_dtype=mxu_dtype)
    p = probs[:, k]
    # [1-p, p] stacking kept in the wrapper so the kernel output stays
    # lane-dense; arithmetic mirrors the PyTorch pred_func exactly.
    return jnp.stack([1.0 - p, p], axis=-1)


# ---------------------------------------------------------------------------
# Pure-JAX references
# ---------------------------------------------------------------------------
def reference_predict_f32(x, w1, b1, omega):
    """Exact f32 arithmetic of the PyTorch module for one task head."""
    h = jnp.maximum(x @ w1 + b1, 0.0)
    logits = (h @ omega.T).squeeze(-1)
    p = jax.nn.sigmoid(logits)
    return jnp.stack([1.0 - p, p], axis=-1)


def reference_predict_matched(x, w1, b1, omega, mxu_dtype=jnp.bfloat16):
    """Same math with the kernel's bf16 MXU-input casts (tight check)."""
    h = jnp.dot(x.astype(mxu_dtype), w1.astype(mxu_dtype),
                preferred_element_type=jnp.float32)
    h = jnp.maximum(h + b1, 0.0)
    logits = jnp.dot(h.astype(mxu_dtype), omega.T.astype(mxu_dtype),
                     preferred_element_type=jnp.float32).squeeze(-1)
    p = jax.nn.sigmoid(logits)
    return jnp.stack([1.0 - p, p], axis=-1)


if __name__ == "__main__":
    # Shapes consistent with the module but tile-friendly so the kernel is not
    # pure launch overhead: batch 200 (padded to 2x128 grid steps), 128-dim
    # features/hidden, 4 task heads (out_dim == 1 each, padded to 128 lanes).
    B, D_IN, H_DIM, OUT_DIM, N_TASKS = 200, 128, 128, 1, 4
    K = 2  # task index to predict, as in predict(x, k)

    key = jax.random.PRNGKey(0)
    k_x, k_w1, k_b1, k_om = jax.random.split(key, 4)

    x = jax.random.normal(k_x, (B, D_IN), dtype=jnp.float32)
    # base model params (Linear D_in -> h_dim, then ReLU)
    w1 = jax.random.normal(k_w1, (D_IN, H_DIM), dtype=jnp.float32) * 0.1
    b1 = jax.random.normal(k_b1, (H_DIM,), dtype=jnp.float32) * 0.1
    # tasks_omegas: create_new_task() draws randn((out_dim, h_dim)); out_dim==1
    omegas = jax.random.normal(k_om, (N_TASKS, H_DIM), dtype=jnp.float32)

    out = clbaseline_predict(x, K, w1, b1, omegas)
    out = jax.block_until_ready(out)
    assert out.shape == (B, 2), out.shape

    omega_k = omegas[K:K + 1]  # [1, H] — the module's omega for task K
    ref_matched = reference_predict_matched(x, w1, b1, omega_k)
    ref_f32 = reference_predict_f32(x, w1, b1, omega_k)

    # Tight check against a reference with identical bf16-MXU casts.
    assert jnp.allclose(out, ref_matched, atol=1e-4, rtol=0), "kernel mismatch"
    # Loose check against the exact-f32 PyTorch arithmetic (bf16 MXU inputs).
    assert jnp.allclose(out, ref_f32, atol=1e-1, rtol=0), "drifted from f32 ref"
    # Rows are a 2-class distribution.
    assert jnp.allclose(out.sum(-1), 1.0, atol=1e-5), "rows must sum to 1"

    # TODO(synk): forward()/create_replay_buffer()/select_inducing() are abstract /
    # host-side buffer management in CLBaseline; only the concrete
    # predict/_compute_task_loss matmul+sigmoid hot path is kernelized.
    # TODO(synk): out_dim > 1 (softmax / CrossEntropy branch) not kernelized here.
    print("KERNEL_OK")
</pallas_src>

<mosaic_0001>
module attributes {stable_mosaic.version = 11 : i64} {
  func.func @clbaseline_kernel(%arg0: i32, %arg1: memref<128x128xbf16, #tpu.memory_space<vmem>>, %arg2: memref<128x128xbf16, #tpu.memory_space<vmem>>, %arg3: memref<1x128xf32, #tpu.memory_space<vmem>>, %arg4: memref<128x128xbf16, #tpu.memory_space<vmem>>, %arg5: memref<128x128xf32, #tpu.memory_space<vmem>>) attributes {dimension_semantics = [#tpu.dimension_semantics<parallel>], iteration_bounds = array<i64: 2>, scalar_prefetch = 0 : i64, scratch_operands = 0 : i64, tpu.core_type = #tpu.core_type<tc>, window_params = [{transform_indices = @transform_0, window_bounds = array<i64: 128, 128>}, {pipeline_mode = #tpu.pipeline_mode<synchronous>, transform_indices = @transform_1, window_bounds = array<i64: 128, 128>}, {pipeline_mode = #tpu.pipeline_mode<synchronous>, transform_indices = @transform_2, window_bounds = array<i64: 1, 128>}, {pipeline_mode = #tpu.pipeline_mode<synchronous>, transform_indices = @transform_3, window_bounds = array<i64: 128, 128>}, {transform_indices = @transform_4, window_bounds = array<i64: 128, 128>}]} {
    %c0 = arith.constant 0 : index
    %c0_0 = arith.constant 0 : index
    %0 = vector.load %arg1[%c0, %c0_0] : memref<128x128xbf16, #tpu.memory_space<vmem>>, vector<128x128xbf16>
    %c0_1 = arith.constant 0 : index
    %c0_2 = arith.constant 0 : index
    %1 = vector.load %arg2[%c0_1, %c0_2] : memref<128x128xbf16, #tpu.memory_space<vmem>>, vector<128x128xbf16>
    %cst = arith.constant dense<0.000000e+00> : vector<128x128xf32>
    %2 = tpu.matmul %0, %1, %cst {dimension_numbers = #tpu.dot_dimension_numbers<[1], [0], [0], [1], [0, 0, 1, 1], [], []>} : vector<128x128xbf16>, vector<128x128xbf16>, vector<128x128xf32> -> vector<128x128xf32>
    %c0_3 = arith.constant 0 : index
    %c0_4 = arith.constant 0 : index
    %3 = vector.load %arg3[%c0_3, %c0_4] : memref<1x128xf32, #tpu.memory_space<vmem>>, vector<1x128xf32>
    %4 = vector.broadcast %3 : vector<1x128xf32> to vector<128x128xf32>
    %5 = arith.addf %2, %4 : vector<128x128xf32>
    %cst_5 = arith.constant 0.000000e+00 : f32
    %6 = vector.broadcast %cst_5 : f32 to vector<128x128xf32>
    %7 = arith.maximumf %5, %6 : vector<128x128xf32>
    %8 = arith.truncf %7 : vector<128x128xf32> to vector<128x128xbf16>
    %c0_6 = arith.constant 0 : index
    %c0_7 = arith.constant 0 : index
    %9 = vector.load %arg4[%c0_6, %c0_7] : memref<128x128xbf16, #tpu.memory_space<vmem>>, vector<128x128xbf16>
    %cst_8 = arith.constant dense<0.000000e+00> : vector<128x128xf32>
    %10 = tpu.matmul %8, %9, %cst_8 {dimension_numbers = #tpu.dot_dimension_numbers<[1], [0], [0], [1], [0, 0, 1, 1], [], []>} : vector<128x128xbf16>, vector<128x128xbf16>, vector<128x128xf32> -> vector<128x128xf32>
    %11 = arith.negf %10 : vector<128x128xf32>
    %12 = math.exp %11 : vector<128x128xf32>
    %cst_9 = arith.constant 1.000000e+00 : f32
    %13 = vector.broadcast %cst_9 : f32 to vector<128x128xf32>
    %14 = arith.addf %13, %12 : vector<128x128xf32>
    %15 = arith.divf %13, %14 : vector<128x128xf32>
    %c0_10 = arith.constant 0 : index
    %c0_11 = arith.constant 0 : index
    %16 = vector.load %arg5[%c0_10, %c0_11] : memref<128x128xf32, #tpu.memory_space<vmem>>, vector<128x128xf32>
    tpu.vector_store %arg5[%c0_10, %c0_11], %15 {strides = array<i32>} : memref<128x128xf32, #tpu.memory_space<vmem>>, vector<128x128xf32>,
    return
  }
  func.func @transform_0(%arg0: i32) -> (i32, i32) {
    %c0_i32 = arith.constant 0 : i32
    %c0_i32_0 = arith.constant 0 : i32
    return %arg0, %c0_i32 : i32, i32
  }
  func.func @transform_1(%arg0: i32) -> (i32, i32) {
    %c0_i32 = arith.constant 0 : i32
    %c0_i32_0 = arith.constant 0 : i32
    %c0_i32_1 = arith.constant 0 : i32
    return %c0_i32, %c0_i32_0 : i32, i32
  }
  func.func @transform_2(%arg0: i32) -> (i32, i32) {
    %c0_i32 = arith.constant 0 : i32
    %c0_i32_0 = arith.constant 0 : i32
    %c0_i32_1 = arith.constant 0 : i32
    return %c0_i32, %c0_i32_0 : i32, i32
  }
  func.func @transform_3(%arg0: i32) -> (i32, i32) {
    %c0_i32 = arith.constant 0 : i32
    %c0_i32_0 = arith.constant 0 : i32
    %c0_i32_1 = arith.constant 0 : i32
    return %c0_i32, %c0_i32_0 : i32, i32
  }
  func.func @transform_4(%arg0: i32) -> (i32, i32) {
    %c0_i32 = arith.constant 0 : i32
    %c0_i32_0 = arith.constant 0 : i32
    return %arg0, %c0_i32 : i32, i32
  }
}

</mosaic_0001>

<bundles_post_ra>
// kernel: clbaseline_predict_all_tasks.1
= control target key start
LH: loop header
LB: loop body
LE: loop exit
PB: predicated region body
PF: predicated region fallthrough
CT: control target
= control target key end

     0   :  { %s1064_s15 = smov 0   ;;  %s1164_s0 = inlined_call_operand.vmem [shape: bf16[256,128], index: 0, kind: input, shape index: {}]   ;;  %s1165_s1 = inlined_call_operand.vmem [shape: bf16[128,128], index: 1, kind: input, shape index: {}]   ;;  %s1166_s2 = inlined_call_operand.vmem [shape: f32[1,128], index: 2, kind: input, shape index: {}]   ;;  %s1167_s3 = inlined_call_operand.vmem [shape: bf16[128,128], index: 3, kind: input, shape index: {}]   ;;  %s1168_s4 = inlined_call_operand.vmem [shape: f32[256,128], index: 4, kind: output, shape index: {}]  }
   0x1 LB: > { %s787_s16 = sadd.s32 4294967295, %s1037_s15   ;;  %p791_p0 = scmp.ge.s32.totalorder %s1037_s15, 1  ;;  %s1037_s15 = sphi %s1064_s15, %s14_s15  }
   0x2   : > { %p163_p1 = scmp.lt.s32.totalorder %s1037_s15, 3 }
   0x4   : > { %p164_p2 = pnand %p791_p0, %p163_p1 }
   0x5   : > { %v943_v0 = vld [vmem:[%s1165_s1] sm:$0xff] (!%p164_p2)   ;;  %s792_s19 = sshll.u32 (!%p164_p2), %s787_s16, 4  ;;  %v944_v1 = vld [vmem:[%s1165_s1 + $0x8] sm:$0xff] (!%p164_p2)   ;;  %v945_v2 = vld [vmem:[%s1165_s1 + $0x10] sm:$0xff] (!%p164_p2)  }
   0x6   : > { %167 = sbr.rel (%p164_p2) target bundleno = 527 (0x20f), region = 36  ;;  %p190_p3 = scmp.lt.s32.totalorder (!%p164_p2), %s792_s19, 31  ;;  %871 = vmatprep.subr.bf16.mxu0 (!%p164_p2), %v943_v0  ;;  %v946_v3 = vld [vmem:[%s1165_s1 + $0x18] sm:$0xff] (!%p164_p2)   ;;  %v947_v5 = vld [vmem:[%s1165_s1 + $0x20] sm:$0xff] (!%p164_p2)   ;;  %v948_v6 = vld [vmem:[%s1165_s1 + $0x28] sm:$0xff] (!%p164_p2)  }
   0x7   : > { %872 = vmatpush3.bf16.msra.mxu0 (!%p164_p2), %v943_v0  ;;  %v959_v7 = vld [vmem:[%s1167_s3] sm:$0xff] (!%p164_p2)   ;;  %v960_v8 = vld [vmem:[%s1167_s3 + $0x8] sm:$0xff] (!%p164_p2)   ;;  %v949_v9 = vld [vmem:[%s1165_s1 + $0x30] sm:$0xff] (!%p164_p2)  }
   0x8   : > { %873 = vmatprep.subr.bf16.mxu0 (!%p164_p2), %v944_v1  ;;  %903 = vmatprep.subr.bf16.mxu1 (!%p164_p2), %v959_v7  ;;  %v961_v10 = vld [vmem:[%s1167_s3 + $0x10] sm:$0xff] (!%p164_p2)   ;;  %v950_v11 = vld [vmem:[%s1165_s1 + $0x38] sm:$0xff] (!%p164_p2)   ;;  %v963_v13 = vld [vmem:[%s1167_s3 + $0x20] sm:$0xff] (!%p164_p2)  }
   0x9   : > { %904 = vmatpush3.bf16.msra.mxu1 (!%p164_p2), %v959_v7  ;;  %v962_v12 = vld [vmem:[%s1167_s3 + $0x18] sm:$0xff] (!%p164_p2)   ;;  %v964_v16 = vld [vmem:[%s1167_s3 + $0x28] sm:$0xff] (!%p164_p2)   ;;  %v965_v22 = vld [vmem:[%s1167_s3 + $0x30] sm:$0xff] (!%p164_p2)  }
   0xa   : > { %905 = vmatprep.subr.bf16.mxu1 (!%p164_p2), %v960_v8  ;;  %v966_v23 = vld [vmem:[%s1167_s3 + $0x38] sm:$0xff] (!%p164_p2)   ;;  %v796_v24 = vld [vmem:[%s1166_s2] ss:$0 sm:$0xff] (!%p164_p2) }
   0xb   : > { %874 = vmatpush3.bf16.msra.mxu0 (!%p164_p2), %v944_v1 }
   0xc   : > { %875 = vmatprep.subr.bf16.mxu0 (!%p164_p2), %v945_v2 }
   0xd   : > { %s1170_s19 = smov (!%p190_p3, %s792_s19), 31  ;;  %906 = vmatpush3.bf16.msra.mxu1 %v960_v8 }
   0xe   : > { %s793_s24 = sshll.u32 %s1170_s19, 2  ;;  %907 = vmatprep.subr.bf16.mxu1 %v961_v10 }
   0xf   : > { %s1087_s27 = scalar_lea.vmem %s1164_s0, %s793_s24  ;;  %876 = vmatpush3.bf16.msra.mxu0 %v945_v2 }
  0x10   : > { %v951_v4 = vld [vmem:[%s1087_s27] sm:$0xff]   ;;  %877 = vmatprep.subr.bf16.mxu0 %v946_v3  ;;  %v952_v14 = vld [vmem:[%s1087_s27 + $0x8] sm:$0xff]   ;;  %v953_v15 = vld [vmem:[%s1087_s27 + $0x10] sm:$0xff]  }
  0x11   : > { %887 = vmatprep.mubr.bf16.mxu0 %v951_v4  ;;  %908 = vmatpush3.bf16.msra.mxu1 %v961_v10  ;;  %v954_v17 = vld [vmem:[%s1087_s27 + $0x18] sm:$0xff]   ;;  %v955_v18 = vld [vmem:[%s1087_s27 + $0x20] sm:$0xff]   ;;  %v956_v19 = vld [vmem:[%s1087_s27 + $0x28] sm:$0xff]  }
  0x12   : > { %909 = vmatprep.subr.bf16.mxu1 %v962_v12  ;;  %v957_v20 = vld [vmem:[%s1087_s27 + $0x30] sm:$0xff]   ;;  %v958_v21 = vld [vmem:[%s1087_s27 + $0x38] sm:$0xff]   ;;  %s795_s27 = sshll.u32 %s1170_s19, 3 }
  0x13   : > { %878 = vmatpush3.bf16.msra.mxu0 %v946_v3  ;;  %s1143_s9 = scalar_lea.vmem %s1168_s4, %s795_s27 }
  0x14   : > { %879 = vmatprep.subr.bf16.mxu0 %v947_v5 }
  0x15   : > { %910 = vmatpush3.bf16.msra.mxu1 %v962_v12 }
  0x16   : > { %911 = vmatprep.subr.bf16.mxu1 %v963_v13 }
  0x17   : > { %880 = vmatpush3.bf16.msra.mxu0 %v947_v5 }
  0x18   : > { %881 = vmatprep.subr.bf16.mxu0 %v948_v6 }
  0x19   : > { %912 = vmatpush3.bf16.msra.mxu1 %v963_v13 }
  0x1a   : > { %913 = vmatprep.subr.bf16.mxu1 %v964_v16 }
  0x1b   : > { %882 = vmatpush3.bf16.msra.mxu0 %v948_v6 }
  0x1c   : > { %883 = vmatprep.subr.bf16.mxu0 %v949_v9 }
  0x1d   : > { %914 = vmatpush3.bf16.msra.mxu1 %v964_v16 }
  0x1e   : > { %915 = vmatprep.subr.bf16.mxu1 %v965_v22 }
  0x1f   : > { %884 = vmatpush3.bf16.msra.mxu0 %v949_v9 }
  0x20   : > { %885 = vmatprep.subr.bf16.mxu0 %v950_v11 }
  0x21   : > { %916 = vmatpush3.bf16.msra.mxu1 %v965_v22 }
  0x22   : > { %917 = vmatprep.subr.bf16.mxu1 %v966_v23 }
  0x23   : > { %886 = vmatpush3.bf16.msra.mxu0 %v950_v11 }
  0x25   : > { %918 = vmatpush3.bf16.msra.mxu1 %v966_v23 }
  0x26   : > { %888 = vmatmul.mubr.bf16.vlgmr.msra.gmra.mrb[0].mxu0 %v952_v14 }
  0x27   : > { %891 = vmatprep.mubr.bf16.mxu0 %v953_v15 }
  0x2e   : > { %892 = vmatmul.mubr.bf16.gmra.mrb[4].mxu0 %v954_v17 }
  0x2f   : > { %895 = vmatprep.mubr.bf16.mxu0 %v955_v18 }
  0x36   : > { %896 = vmatmul.mubr.bf16.gmra.mrb[8].mxu0 %v956_v19 }
  0x37   : > { %899 = vmatprep.mubr.bf16.mxu0 %v957_v20 }
  0x3e   : > { %900 = vmatmul.mubr.bf16.gmra.mrb[12].mxu0 %v958_v21 }
  0xf9   : > { %v889_v25 = vpop.f32.mrb[0].mxu0 }
  0xfa   : > { %v380_v26 = vadd.f32 %v889_v25, %v796_v24  ;;  %v371_v27 = vpop.f32.mrb[1].mxu0 }
  0xfb   : > { %v372_v28 = vadd.f32 %v796_v24, %v371_v27  ;;  %v890_v29 = vpop.f32.mrb[2].mxu0 }
  0xfc   : > { %v383_v30 = vadd.f32 %v890_v29, %v796_v24  ;;  %v374_v31 = vpop.f32.mrb[3].mxu0  ;;  %v436_v33 = vmax.f32 %v380_v26, 0.0 }
  0xfd   : > { %v375_v32 = vadd.f32 %v796_v24, %v374_v31  ;;  %v434_v35 = vmax.f32 %v372_v28, 0.0 }
  0xfe   : > { %v437_v34 = vmax.f32 %v383_v30, 0.0 }
  0xff   : > { %v435_v36 = vmax.f32 %v375_v32, 0.0 }
 0x100   : > { %v451_v37 = vpack.c.bf16 %v437_v34, %v436_v33 }
 0x101   : > { %v893_v38 = vpop.f32.mrb[4].mxu0  ;;  %v450_v39 = vpack.c.bf16 %v435_v36, %v434_v35 }
 0x102   : > { %v396_v40 = vadd.f32 %v893_v38, %v796_v24  ;;  %v387_v41 = vpop.f32.mrb[5].mxu0 }
 0x103   : > { %v388_v42 = vadd.f32 %v796_v24, %v387_v41  ;;  %v894_v43 = vpop.f32.mrb[6].mxu0  ;;  %919 = vmatprep.mubr.bf16.mxu1 %v450_v39 }
 0x104   : > { %v399_v44 = vadd.f32 %v894_v43, %v796_v24  ;;  %v390_v45 = vpop.f32.mrb[7].mxu0  ;;  %920 = vmatmul.mubr.bf16.vlgmr.msra.gmra.mrb[0].mxu1 %v451_v37  ;;  %v440_v47 = vmax.f32 %v396_v40, 0.0 }
 0x105   : > { %v391_v46 = vadd.f32 %v796_v24, %v390_v45  ;;  %v438_v49 = vmax.f32 %v388_v42, 0.0 }
 0x106   : > { %v441_v48 = vmax.f32 %v399_v44, 0.0 }
 0x107   : > { %v439_v50 = vmax.f32 %v391_v46, 0.0 }
 0x108   : > { %v453_v51 = vpack.c.bf16 %v441_v48, %v440_v47 }
 0x109   : > { %v452_v52 = vpack.c.bf16 %v439_v50, %v438_v49  ;;  %v897_v53 = vpop.f32.mrb[8].mxu0 }
 0x10a   : > { %v412_v54 = vadd.f32 %v897_v53, %v796_v24  ;;  %v403_v55 = vpop.f32.mrb[9].mxu0 }
 0x10b   : > { %v404_v56 = vadd.f32 %v796_v24, %v403_v55  ;;  %v898_v57 = vpop.f32.mrb[10].mxu0  ;;  %923 = vmatprep.mubr.bf16.mxu1 %v452_v52 }
 0x10c   : > { %v415_v58 = vadd.f32 %v898_v57, %v796_v24  ;;  %v406_v59 = vpop.f32.mrb[11].mxu0  ;;  %924 = vmatmul.mubr.bf16.gmra.mrb[4].mxu1 %v453_v51  ;;  %v444_v61 = vmax.f32 %v412_v54, 0.0 }
 0x10d   : > { %v407_v60 = vadd.f32 %v796_v24, %v406_v59  ;;  %v442_v63 = vmax.f32 %v404_v56, 0.0 }
 0x10e   : > { %v445_v62 = vmax.f32 %v415_v58, 0.0 }
 0x10f   : > { %v443_v0 = vmax.f32 %v407_v60, 0.0 }
 0x110   : > { %v455_v1 = vpack.c.bf16 %v445_v62, %v444_v61 }
 0x111   : > { %v454_v2 = vpack.c.bf16 %v443_v0, %v442_v63  ;;  %v901_v3 = vpop.f32.mrb[12].mxu0 }
 0x112   : > { %v428_v4 = vadd.f32 %v901_v3, %v796_v24  ;;  %v419_v5 = vpop.f32.mrb[13].mxu0 }
 0x113   : > { %v420_v6 = vadd.f32 %v796_v24, %v419_v5  ;;  %v902_v7 = vpop.f32.mrb[14].mxu0  ;;  %927 = vmatprep.mubr.bf16.mxu1 %v454_v2 }
 0x114   : > { %v431_v8 = vadd.f32 %v902_v7, %v796_v24  ;;  %v422_v9 = vpop.f32.mrb[15].mxu0  ;;  %928 = vmatmul.mubr.bf16.gmra.mrb[8].mxu1 %v455_v1  ;;  %v448_v11 = vmax.f32 %v428_v4, 0.0 }
 0x115   : > { %v423_v10 = vadd.f32 %v796_v24, %v422_v9  ;;  %v446_v13 = vmax.f32 %v420_v6, 0.0 }
 0x116   : > { %v449_v12 = vmax.f32 %v431_v8, 0.0 }
 0x117   : > { %v447_v14 = vmax.f32 %v423_v10, 0.0 }
 0x118   : > { %v457_v15 = vpack.c.bf16 %v449_v12, %v448_v11 }
 0x119   : > { %v456_v16 = vpack.c.bf16 %v447_v14, %v446_v13 }
 0x11b   : > { %931 = vmatprep.mubr.bf16.mxu1 %v456_v16 }
 0x11c   : > { %932 = vmatmul.mubr.bf16.gmra.mrb[12].mxu1 %v457_v15 }
 0x1d7   : > { %v921_v17 = vpop.f32.mrb[0].mxu1 }
 0x1d8   : > { %v823_v18 = vmul.f32 -1.442695, %v921_v17  ;;  %v556_v19 = vpop.f32.mrb[1].mxu1 }
 0x1d9   : > { %v821_v20 = vmul.f32 -1.442695, %v556_v19  ;;  %v922_v21 = vpop.f32.mrb[2].mxu1 }
 0x1da   : > { %967 = vpow2.f32 %v823_v18  ;;  %v824_v22 = vmul.f32 -1.442695, %v922_v21  ;;  %v559_v23 = vpop.f32.mrb[3].mxu1 }
 0x1db   : > { %969 = vpow2.f32 %v821_v20  ;;  %v822_v25 = vmul.f32 -1.442695, %v559_v23 }
 0x1dc   : > { %971 = vpow2.f32 %v824_v22 }
 0x1dd   : > { %973 = vpow2.f32 %v822_v25 }
 0x1df   : > { %v925_v24 = vpop.f32.mrb[4].mxu1 }
 0x1e0   : > { %v827_v26 = vmul.f32 -1.442695, %v925_v24  ;;  %v572_v27 = vpop.f32.mrb[5].mxu1 }
 0x1e1   : > { %v825_v28 = vmul.f32 -1.442695, %v572_v27  ;;  %v926_v29 = vpop.f32.mrb[6].mxu1 }
 0x1e2   : > { %975 = vpow2.f32 %v827_v26  ;;  %v828_v30 = vmul.f32 -1.442695, %v926_v29  ;;  %v575_v31 = vpop.f32.mrb[7].mxu1 }
 0x1e3   : > { %977 = vpow2.f32 %v825_v28  ;;  %v826_v32 = vmul.f32 -1.442695, %v575_v31 }
 0x1e4   : > { %v968_v33 = vpop.eup %967  ;;  %979 = vpow2.f32 %v828_v30 }
 0x1e5   : > { %v970_v34 = vpop.eup %969  ;;  %v669_v35 = vadd.f32 1.0, %v968_v33  ;;  %981 = vpow2.f32 %v826_v32 }
 0x1e6   : > { %v972_v36 = vpop.eup %971  ;;  %v667_v37 = vadd.f32 1.0, %v970_v34 }
 0x1e7   : > { %v974_v38 = vpop.eup %973  ;;  %983 = vrcp.f32 %v669_v35  ;;  %v670_v39 = vadd.f32 1.0, %v972_v36  ;;  %v929_v40 = vpop.f32.mrb[8].mxu1 }
 0x1e8   : > { %985 = vrcp.f32 %v667_v37  ;;  %v668_v41 = vadd.f32 1.0, %v974_v38  ;;  %v831_v42 = vmul.f32 -1.442695, %v929_v40  ;;  %v588_v43 = vpop.f32.mrb[9].mxu1 }
 0x1e9   : > { %987 = vrcp.f32 %v670_v39  ;;  %v829_v44 = vmul.f32 -1.442695, %v588_v43  ;;  %v930_v45 = vpop.f32.mrb[10].mxu1 }
 0x1ea   : > { %989 = vrcp.f32 %v668_v41  ;;  %v832_v46 = vmul.f32 -1.442695, %v930_v45  ;;  %v591_v47 = vpop.f32.mrb[11].mxu1 }
 0x1eb   : > { %991 = vpow2.f32 %v831_v42  ;;  %v830_v48 = vmul.f32 -1.442695, %v591_v47 }
 0x1ec   : > { %v976_v49 = vpop.eup %975  ;;  %993 = vpow2.f32 %v829_v44 }
 0x1ed   : > { %v978_v50 = vpop.eup %977  ;;  %v673_v51 = vadd.f32 1.0, %v976_v49  ;;  %995 = vpow2.f32 %v832_v46 }
 0x1ee   : > { %v980_v52 = vpop.eup %979  ;;  %v671_v53 = vadd.f32 1.0, %v978_v50  ;;  %997 = vpow2.f32 %v830_v48 }
 0x1ef   : > { %v982_v54 = vpop.eup %981  ;;  %999 = vrcp.f32 %v673_v51  ;;  %v674_v55 = vadd.f32 1.0, %v980_v52  ;;  %v933_v56 = vpop.f32.mrb[12].mxu1 }
 0x1f0   : > { %1001 = vrcp.f32 %v671_v53  ;;  %v672_v57 = vadd.f32 1.0, %v982_v54  ;;  %v835_v58 = vmul.f32 -1.442695, %v933_v56  ;;  %v604_v59 = vpop.f32.mrb[13].mxu1 }
 0x1f1   : > { %v984_v60 = vpop.eup %983  ;;  %1003 = vrcp.f32 %v674_v55  ;;  %v833_v61 = vmul.f32 -1.442695, %v604_v59  ;;  %v934_v62 = vpop.f32.mrb[14].mxu1 }
 0x1f2   : > { %v986_v63 = vpop.eup %985  ;;  %717 = vst [vmem:[%s1143_s9 + $0x10] sm:$0xff] %v984_v60  ;;  %1005 = vrcp.f32 %v672_v57  ;;  %v836_v0 = vmul.f32 -1.442695, %v934_v62  ;;  %v607_v1 = vpop.f32.mrb[15].mxu1 }
 0x1f3   : > { %v988_v2 = vpop.eup %987  ;;  %715 = vst [vmem:[%s1143_s9] sm:$0xff] %v986_v63  ;;  %1007 = vpow2.f32 %v835_v58  ;;  %v834_v3 = vmul.f32 -1.442695, %v607_v1 }
 0x1f4   : > { %v990_v4 = vpop.eup %989  ;;  %718 = vst [vmem:[%s1143_s9 + $0x18] sm:$0xff] %v988_v2  ;;  %1009 = vpow2.f32 %v833_v61 }
 0x1f5   : > { %v992_v5 = vpop.eup %991  ;;  %716 = vst [vmem:[%s1143_s9 + $0x8] sm:$0xff] %v990_v4  ;;  %1011 = vpow2.f32 %v836_v0 }
 0x1f6   : > { %v994_v6 = vpop.eup %993  ;;  %v677_v7 = vadd.f32 1.0, %v992_v5  ;;  %1013 = vpow2.f32 %v834_v3 }
 0x1f7   : > { %v996_v8 = vpop.eup %995  ;;  %v675_v9 = vadd.f32 1.0, %v994_v6 }
 0x1f8   : > { %v998_v10 = vpop.eup %997  ;;  %1015 = vrcp.f32 %v677_v7  ;;  %v678_v11 = vadd.f32 1.0, %v996_v8 }
 0x1f9   : > { %v1000_v12 = vpop.eup %999  ;;  %1017 = vrcp.f32 %v675_v9  ;;  %v676_v13 = vadd.f32 1.0, %v998_v10 }
 0x1fa   : > { %v1002_v14 = vpop.eup %1001  ;;  %721 = vst [vmem:[%s1143_s9 + $0x30] sm:$0xff] %v1000_v12  ;;  %1019 = vrcp.f32 %v678_v11 }
 0x1fb   : > { %v1004_v15 = vpop.eup %1003  ;;  %719 = vst [vmem:[%s1143_s9 + $0x20] sm:$0xff] %v1002_v14  ;;  %1021 = vrcp.f32 %v676_v13 }
 0x1fc   : > { %v1006_v16 = vpop.eup %1005  ;;  %722 = vst [vmem:[%s1143_s9 + $0x38] sm:$0xff] %v1004_v15 }
 0x1fd   : > { %v1008_v17 = vpop.eup %1007  ;;  %720 = vst [vmem:[%s1143_s9 + $0x28] sm:$0xff] %v1006_v16 }
 0x1fe   : > { %v1010_v18 = vpop.eup %1009  ;;  %v681_v19 = vadd.f32 1.0, %v1008_v17 }
 0x1ff   : > { %v1012_v20 = vpop.eup %1011  ;;  %v679_v21 = vadd.f32 1.0, %v1010_v18 }
 0x200   : > { %v1014_v22 = vpop.eup %1013  ;;  %1023 = vrcp.f32 %v681_v19  ;;  %v682_v23 = vadd.f32 1.0, %v1012_v20 }
 0x201   : > { %1025 = vrcp.f32 %v679_v21  ;;  %v680_v25 = vadd.f32 1.0, %v1014_v22 }
 0x202   : > { %v1016_v24 = vpop.eup %1015  ;;  %1027 = vrcp.f32 %v682_v23 }
 0x203   : > { %v1018_v26 = vpop.eup %1017  ;;  %725 = vst [vmem:[%s1143_s9 + $0x50] sm:$0xff] %v1016_v24  ;;  %1029 = vrcp.f32 %v680_v25 }
 0x204   : > { %v1020_v27 = vpop.eup %1019  ;;  %723 = vst [vmem:[%s1143_s9 + $0x40] sm:$0xff] %v1018_v26 }
 0x205   : > { %v1022_v28 = vpop.eup %1021  ;;  %726 = vst [vmem:[%s1143_s9 + $0x58] sm:$0xff] %v1020_v27 }
 0x206   : > { %724 = vst [vmem:[%s1143_s9 + $0x48] sm:$0xff] %v1022_v28 }
 0x20a   : > { %v1024_v29 = vpop.eup %1023 }
 0x20b   : > { %v1026_v30 = vpop.eup %1025  ;;  %729 = vst [vmem:[%s1143_s9 + $0x70] sm:$0xff] %v1024_v29 }
 0x20c   : > { %v1028_v31 = vpop.eup %1027  ;;  %727 = vst [vmem:[%s1143_s9 + $0x60] sm:$0xff] %v1026_v30 }
 0x20d   : > { %v1030_v32 = vpop.eup %1029  ;;  %730 = vst [vmem:[%s1143_s9 + $0x78] sm:$0xff] %v1028_v31 }
 0x20e   : > { %728 = vst [vmem:[%s1143_s9 + $0x68] sm:$0xff] %v1030_v32 }
 0x20f PF: > { %s14_s15 = sadd.s32 1, %s1037_s15  }
 0x210   : > { %p11_p4 = scmp.ge.s32.totalorder %s14_s15, 4  }
 0x212   :  { %13 = sbr.rel (!%p11_p4) target bundleno = 1 (0x1), region = 66 }

</bundles_post_ra>
